<compile_context>
chip_gen: v5e
topology: v5e:2x2
jax: 0.10.0
libtpu: 0.0.40
codegen_flags: <defaults>
</compile_context>

<pallas_src>
import jax
import jax.numpy as jnp
from jax.experimental import pallas as pl
from jax.experimental.pallas import tpu as pltpu

_LANE = 128
_SUBLANE = 8

# Fused (VMEM-resident table) path gates.
_FUSED_MAX_TABLE_ROWS = 4096          # keeps the one-hot MXU work negligible
_FUSED_MAX_TABLE_BYTES = 4 << 20      # lane-padded, double-buffered table bytes


def _round_up(x, m):
    return -(-x // m) * m


def _pick_tile(batch, max_tile_rows):
    """Multiple-of-128 batch tile.

    Keeps >= 2 grid tiles whenever the 128-padded batch allows, so
    dimension_semantics=("parallel",) can shard tiles across v7x's two
    TensorCores (harmless on v5e/v6e: one extra ~0.35 us grid step).
    """
    b128 = _round_up(batch, _LANE)
    max_tile_rows = max(_LANE, (max_tile_rows // _LANE) * _LANE)
    tile = min(max_tile_rows, b128)
    if tile == b128 and b128 >= 2 * _LANE:
        tile = max(_LANE, (b128 // 2 // _LANE) * _LANE)
    num_tiles = -(-batch // tile)
    return tile, num_tiles


# ---------------------------------------------------------------------------
# Fused path: embedding tables resident in VMEM, gather done in-kernel.
# ---------------------------------------------------------------------------
def _bprmf_fused_kernel(u_t_ref, v_t_ref, uid_ref, vid_ref, o_ref):
    """Gather-fused BPRMF scores for one batch tile.

    u_t_ref: (E, num_user)  transposed user table, VMEM-resident (constant block)
    v_t_ref: (E, num_item)  transposed item table, VMEM-resident (constant block)
    uid_ref, vid_ref: (1, tile_b) int32 ids for this tile (batch on lanes)
    o_ref:   (1, tile_b) f32 scores (lane-dense store)
    """
    f32 = jnp.float32
    uid = uid_ref[...]                       # (1, tb) int32
    vid = vid_ref[...]
    nu = u_t_ref.shape[1]
    nv = v_t_ref.shape[1]
    tb = uid.shape[-1]

    # One-hot gather via the MXU: (E, N) @ (N, tb) -> (E, tb).
    # Ids stay lane-aligned; no relayout needed for the compare.
    oh_u = (jax.lax.broadcasted_iota(jnp.int32, (nu, tb), 0) == uid).astype(f32)
    oh_v = (jax.lax.broadcasted_iota(jnp.int32, (nv, tb), 0) == vid).astype(f32)
    ue_t = jnp.dot(u_t_ref[...].astype(f32), oh_u,
                   precision=jax.lax.Precision.HIGHEST,
                   preferred_element_type=f32)              # (E, tb)
    ve_t = jnp.dot(v_t_ref[...].astype(f32), oh_v,
                   precision=jax.lax.Precision.HIGHEST,
                   preferred_element_type=f32)              # (E, tb)

    # Batch stays on lanes: sublane reduce -> (1, tb), unmasked lane-dense vst.
    o_ref[...] = jnp.sum(ue_t * ve_t, axis=0, keepdims=True).astype(o_ref.dtype)


def _forward_fused(U, V, uid, vid):
    Nu, E = int(U.shape[0]), int(U.shape[1])
    Nv = int(V.shape[0])
    B = int(uid.shape[0])
    itemsize = jnp.dtype(U.dtype).itemsize

    # Tile capped so the in-kernel one-hot intermediates stay <= ~8 MiB.
    onehot_row_bytes = (_round_up(Nu, _SUBLANE) + _round_up(Nv, _SUBLANE)) * 4
    max_tile = min(2048, (8 << 20) // onehot_row_bytes)
    tile, num_tiles = _pick_tile(B, max_tile)
    B_pad = tile * num_tiles

    if B_pad != B:
        pad = B_pad - B
        uid = jnp.pad(uid, (0, pad))          # index 0 is always valid
        vid = jnp.pad(vid, (0, pad))
    uid2 = uid.astype(jnp.int32).reshape(1, B_pad)
    vid2 = vid.astype(jnp.int32).reshape(1, B_pad)

    # VMEM budget (lane/sublane padded, double-buffered where pipelined).
    e_sub = _round_up(E, _SUBLANE)
    tables = 2 * e_sub * (_round_up(Nu, _LANE) + _round_up(Nv, _LANE)) * itemsize
    ids_out = 3 * 2 * _SUBLANE * tile * 4
    interm = (_round_up(Nu, _SUBLANE) + _round_up(Nv, _SUBLANE) + 2 * e_sub) * tile * 4
    vmem_limit = int(min(48 << 20, max(32 << 20, 2 * (tables + ids_out + interm))))

    out = pl.pallas_call(
        _bprmf_fused_kernel,
        out_shape=jax.ShapeDtypeStruct((1, B_pad), jnp.float32),
        grid_spec=pltpu.PrefetchScalarGridSpec(
            num_scalar_prefetch=0,
            grid=(num_tiles,),
            in_specs=[
                pl.BlockSpec((E, Nu), lambda i: (0, 0)),   # whole table, fetched once
                pl.BlockSpec((E, Nv), lambda i: (0, 0)),
                pl.BlockSpec((1, tile), lambda i: (0, i)),
                pl.BlockSpec((1, tile), lambda i: (0, i)),
            ],
            out_specs=pl.BlockSpec((1, tile), lambda i: (0, i)),
        ),
        compiler_params=pltpu.CompilerParams(
            dimension_semantics=("parallel",),     # shard batch tiles across TCs
            vmem_limit_bytes=vmem_limit,
        ),
    )(U.T, V.T, uid2, vid2)
    return out.reshape(-1)[:B]


# ---------------------------------------------------------------------------
# Fallback path for large tables: wrapper-side gather, in-kernel mul + reduce.
# ---------------------------------------------------------------------------
def _bprmf_gathered_kernel(u_ref, v_ref, o_ref):
    """Per-tile elementwise multiply (VPU) + lane-axis reduce (XLU).

    u_ref, v_ref: (tile_b, E) gathered embedding rows.
    o_ref:        (1, tile_b) lane-dense scores for this tile.
    """
    u = u_ref[...].astype(jnp.float32)       # f32 accumulation for bf16 variants
    v = v_ref[...].astype(jnp.float32)
    s = jnp.sum(u * v, axis=-1)              # (tile_b,)
    o_ref[...] = s[None, :].astype(o_ref.dtype)


def _forward_gathered(U, V, uid, vid):
    E = int(U.shape[1])
    B = int(uid.shape[0])
    itemsize = jnp.dtype(U.dtype).itemsize

    # Lane-pad-corrected row size: a (tile_b, E) block occupies 128-lane-padded
    # VMEM. 2 inputs x 2 pipeline buffers against a 24 MiB input budget.
    per_row_bytes = 2 * 2 * _round_up(E, _LANE) * itemsize
    max_tile = min(4096, max(_LANE, (24 << 20) // per_row_bytes))
    tile, num_tiles = _pick_tile(B, max_tile)
    B_pad = tile * num_tiles

    if B_pad != B:
        pad = B_pad - B
        uid = jnp.pad(uid, (0, pad))
        vid = jnp.pad(vid, (0, pad))

    ue = jnp.take(U, uid, axis=0)            # (B_pad, E)
    ve = jnp.take(V, vid, axis=0)

    est = per_row_bytes * tile + 2 * _SUBLANE * tile * 4 + (1 << 20)
    vmem_limit = int(min(48 << 20, max(32 << 20, 2 * est)))

    out = pl.pallas_call(
        _bprmf_gathered_kernel,
        out_shape=jax.ShapeDtypeStruct((1, B_pad), jnp.float32),
        grid_spec=pltpu.PrefetchScalarGridSpec(
            num_scalar_prefetch=0,
            grid=(num_tiles,),
            in_specs=[
                pl.BlockSpec((tile, E), lambda i: (i, 0)),
                pl.BlockSpec((tile, E), lambda i: (i, 0)),
            ],
            out_specs=pl.BlockSpec((1, tile), lambda i: (0, i)),
        ),
        compiler_params=pltpu.CompilerParams(
            dimension_semantics=("parallel",),
            vmem_limit_bytes=vmem_limit,
        ),
    )(ue, ve)
    return out.reshape(-1)[:B]


# ---------------------------------------------------------------------------
# Public entry point: BPRMF.forward(user, item)
# ---------------------------------------------------------------------------
def bprmf_forward(U, V, user_ids, item_ids, *, allow_xla_fast_path=True):
    """score[b] = sum_e U[user_ids[b], e] * V[item_ids[b], e]."""
    U = jnp.asarray(U)
    V = jnp.asarray(V)
    user_ids = jnp.asarray(user_ids).astype(jnp.int32)
    item_ids = jnp.asarray(item_ids).astype(jnp.int32)
    B = int(user_ids.shape[0])
    Nu, E = int(U.shape[0]), int(U.shape[1])
    Nv = int(V.shape[0])

    # Tiny problems: the pallas_call fixed cost dominates; let XLA fuse it.
    if allow_xla_fast_path and B <= 256 and E <= 64:
        return jnp.sum(jnp.take(U, user_ids, axis=0) *
                       jnp.take(V, item_ids, axis=0), axis=1)

    itemsize = jnp.dtype(U.dtype).itemsize
    table_vmem = (2 * _round_up(E, _SUBLANE) *
                  (_round_up(Nu, _LANE) + _round_up(Nv, _LANE)) * itemsize)
    if (Nu + Nv) <= _FUSED_MAX_TABLE_ROWS and table_vmem <= _FUSED_MAX_TABLE_BYTES:
        return _forward_fused(U, V, user_ids, item_ids)

    # Large tables: gather stays in the wrapper (see TODO at top of file).
    return _forward_gathered(U, V, user_ids, item_ids)


if __name__ == "__main__":
    key = jax.random.PRNGKey(0)
    k_u, k_v, k_ui, k_ii, k_u2, k_v2, k_ui2, k_ii2 = jax.random.split(key, 8)

    # --- Small config: exercises the gather-fused, VMEM-resident-table kernel.
    num_user, num_item, edim, batch = 64, 128, 32, 16
    U = jax.random.normal(k_u, (num_user, edim), dtype=jnp.float32) * 0.1
    V = jax.random.normal(k_v, (num_item, edim), dtype=jnp.float32) * 0.1
    user_ids = jax.random.randint(k_ui, (batch,), 0, num_user, dtype=jnp.int32)
    item_ids = jax.random.randint(k_ii, (batch,), 0, num_item, dtype=jnp.int32)

    scores = jax.block_until_ready(
        bprmf_forward(U, V, user_ids, item_ids, allow_xla_fast_path=False))
    ref = jnp.sum(jnp.take(U, user_ids, 0) * jnp.take(V, item_ids, 0), axis=1)
    assert scores.shape == (batch,)
    # MXU one-hot gather may round table operands; allow matmul-level tolerance.
    assert jnp.allclose(scores, ref, atol=2e-3, rtol=2e-2), \
        float(jnp.max(jnp.abs(scores - ref)))

    # --- Larger-table config: exercises the wrapper-gather + mul/reduce kernel.
    nu2, nv2, e2, b2 = 5000, 3000, 32, 700
    U2 = jax.random.normal(k_u2, (nu2, e2), dtype=jnp.float32) * 0.1
    V2 = jax.random.normal(k_v2, (nv2, e2), dtype=jnp.float32) * 0.1
    uid2 = jax.random.randint(k_ui2, (b2,), 0, nu2, dtype=jnp.int32)
    vid2 = jax.random.randint(k_ii2, (b2,), 0, nv2, dtype=jnp.int32)

    scores2 = jax.block_until_ready(
        bprmf_forward(U2, V2, uid2, vid2, allow_xla_fast_path=False))
    ref2 = jnp.sum(jnp.take(U2, uid2, 0) * jnp.take(V2, vid2, 0), axis=1)
    assert scores2.shape == (b2,)
    assert jnp.allclose(scores2, ref2, atol=1e-5, rtol=1e-5)

    print("KERNEL_OK")
</pallas_src>

<mosaic_0001>
module attributes {stable_mosaic.version = 11 : i64} {
  func.func @_bprmf_fused_kernel(%arg0: i32, %arg1: memref<32x64xf32, #tpu.memory_space<vmem>>, %arg2: memref<32x128xf32, #tpu.memory_space<vmem>>, %arg3: memref<1x128xi32, #tpu.memory_space<vmem>>, %arg4: memref<1x128xi32, #tpu.memory_space<vmem>>, %arg5: memref<1x128xf32, #tpu.memory_space<vmem>>) attributes {dimension_semantics = [#tpu.dimension_semantics<parallel>], iteration_bounds = array<i64: 1>, scalar_prefetch = 0 : i64, scratch_operands = 0 : i64, tpu.core_type = #tpu.core_type<tc>, window_params = [{pipeline_mode = #tpu.pipeline_mode<synchronous>, transform_indices = @transform_0, window_bounds = array<i64: 32, 64>}, {pipeline_mode = #tpu.pipeline_mode<synchronous>, transform_indices = @transform_1, window_bounds = array<i64: 32, 128>}, {transform_indices = @transform_2, window_bounds = array<i64: 1, 128>}, {transform_indices = @transform_3, window_bounds = array<i64: 1, 128>}, {transform_indices = @transform_4, window_bounds = array<i64: 1, 128>}]} {
    %c0 = arith.constant 0 : index
    %c0_0 = arith.constant 0 : index
    %0 = vector.load %arg3[%c0, %c0_0] : memref<1x128xi32, #tpu.memory_space<vmem>>, vector<1x128xi32>
    %c0_1 = arith.constant 0 : index
    %c0_2 = arith.constant 0 : index
    %1 = vector.load %arg4[%c0_1, %c0_2] : memref<1x128xi32, #tpu.memory_space<vmem>>, vector<1x128xi32>
    %2 = tpu.iota {dimensions = array<i32: 0>} : vector<64x128xi32>
    %3 = vector.broadcast %0 : vector<1x128xi32> to vector<64x128xi32>
    %4 = arith.cmpi eq, %2, %3 : vector<64x128xi32>
    %5 = arith.extui %4 : vector<64x128xi1> to vector<64x128xi32>
    %6 = arith.sitofp %5 : vector<64x128xi32> to vector<64x128xf32>
    %7 = tpu.iota {dimensions = array<i32: 0>} : vector<128x128xi32>
    %8 = vector.broadcast %1 : vector<1x128xi32> to vector<128x128xi32>
    %9 = arith.cmpi eq, %7, %8 : vector<128x128xi32>
    %10 = arith.extui %9 : vector<128x128xi1> to vector<128x128xi32>
    %11 = arith.sitofp %10 : vector<128x128xi32> to vector<128x128xf32>
    %c0_3 = arith.constant 0 : index
    %c0_4 = arith.constant 0 : index
    %12 = vector.load %arg1[%c0_3, %c0_4] : memref<32x64xf32, #tpu.memory_space<vmem>>, vector<32x64xf32>
    %cst = arith.constant dense<0.000000e+00> : vector<32x128xf32>
    %13 = tpu.matmul %12, %6, %cst {dimension_numbers = #tpu.dot_dimension_numbers<[1], [0], [0], [1], [0, 0, 1, 1], [], []>, precision = #tpu.contract_precision<fp32>} : vector<32x64xf32>, vector<64x128xf32>, vector<32x128xf32> -> vector<32x128xf32>
    %c0_5 = arith.constant 0 : index
    %c0_6 = arith.constant 0 : index
    %14 = vector.load %arg2[%c0_5, %c0_6] : memref<32x128xf32, #tpu.memory_space<vmem>>, vector<32x128xf32>
    %cst_7 = arith.constant dense<0.000000e+00> : vector<32x128xf32>
    %15 = tpu.matmul %14, %11, %cst_7 {dimension_numbers = #tpu.dot_dimension_numbers<[1], [0], [0], [1], [0, 0, 1, 1], [], []>, precision = #tpu.contract_precision<fp32>} : vector<32x128xf32>, vector<128x128xf32>, vector<32x128xf32> -> vector<32x128xf32>
    %16 = arith.mulf %13, %15 : vector<32x128xf32>
    %cst_8 = arith.constant dense<0.000000e+00> : vector<128xf32>
    %17 = vector.multi_reduction <add>, %16, %cst_8 [0] : vector<32x128xf32> to vector<128xf32>
    %18 = vector.shape_cast %17 : vector<128xf32> to vector<1x128xf32>
    %c0_9 = arith.constant 0 : index
    %c0_10 = arith.constant 0 : index
    %19 = vector.load %arg5[%c0_9, %c0_10] : memref<1x128xf32, #tpu.memory_space<vmem>>, vector<1x128xf32>
    tpu.vector_store %arg5[%c0_9, %c0_10], %18 {strides = array<i32>} : memref<1x128xf32, #tpu.memory_space<vmem>>, vector<1x128xf32>,
    return
  }
  func.func @transform_0(%arg0: i32) -> (i32, i32) {
    %c0_i32 = arith.constant 0 : i32
    %c0_i32_0 = arith.constant 0 : i32
    %c0_i32_1 = arith.constant 0 : i32
    return %c0_i32, %c0_i32_0 : i32, i32
  }
  func.func @transform_1(%arg0: i32) -> (i32, i32) {
    %c0_i32 = arith.constant 0 : i32
    %c0_i32_0 = arith.constant 0 : i32
    %c0_i32_1 = arith.constant 0 : i32
    return %c0_i32, %c0_i32_0 : i32, i32
  }
  func.func @transform_2(%arg0: i32) -> (i32, i32) {
    %c0_i32 = arith.constant 0 : i32
    %c0_i32_0 = arith.constant 0 : i32
    return %c0_i32, %arg0 : i32, i32
  }
  func.func @transform_3(%arg0: i32) -> (i32, i32) {
    %c0_i32 = arith.constant 0 : i32
    %c0_i32_0 = arith.constant 0 : i32
    return %c0_i32, %arg0 : i32, i32
  }
  func.func @transform_4(%arg0: i32) -> (i32, i32) {
    %c0_i32 = arith.constant 0 : i32
    %c0_i32_0 = arith.constant 0 : i32
    return %c0_i32, %arg0 : i32, i32
  }
}

</mosaic_0001>

<bundles_post_ra>
// kernel: tpu_custom_call.1
= control target key start
LH: loop header
LB: loop body
LE: loop exit
PB: predicated region body
PF: predicated region fallthrough
CT: control target
= control target key end

     0   :  { %9 = vsyncpa [#allocation3], 0  ;;  %s1997_s0 = inlined_call_operand.hbm [shape: f32[32,64], index: 0, kind: input, shape index: {}]   ;;  %s1998_s1 = inlined_call_operand.hbm [shape: f32[32,128], index: 1, kind: input, shape index: {}]   ;;  %s1999_s2 = inlined_call_operand.vmem [shape: s32[1,128], index: 2, kind: input, shape index: {}]   ;;  %s2000_s3 = inlined_call_operand.vmem [shape: s32[1,128], index: 3, kind: input, shape index: {}]   ;;  %s2001_s4 = inlined_call_operand.hbm [shape: f32[1,128], index: 4, kind: output, shape index: {}]  }
   0x1   :  { %10 = vsyncpa [#allocation6], 0 }
   0x2   :  { %11 = vsyncpa [#allocation4], 0  ;;  %s16_s17 = sshll.u32 %s1997_s0, 4  ;;  %s1143_s18 = smov [#allocation2]   ;;  %s17_s17 = int_to_ptr.hbm [resolvable:$true] %s16_s17 }
   0x3   :  { %s18_s19 = sshll.u32 %s1143_s18, 4  ;;  %s29_s22 = sshll.u32 %s1998_s1, 4  ;;  %s19_s19 = int_to_ptr.vmem [resolvable:$true] %s18_s19  ;;  %s30_s22 = int_to_ptr.hbm [resolvable:$true] %s29_s22 }
   0x4   :  { %s1144_s23 = smov 128   ;;  %s1145_s24 = smov 8  }
   0x5   :  { %24 = dma.hbm_to_vmem [thread:$0]  %s17_s17, 512, %s19_s19, [#allocation3], %s1144_s23, %s1144_s23, %s1145_s24  }
   0x6   :  { %s1146_s25 = smov [#allocation5]  }
   0x7   :  { %s31_s26 = sshll.u32 %s1146_s25, 4  ;;  %s32_s26 = int_to_ptr.vmem [resolvable:$true] %s31_s26 }
   0x8   :  { %37 = dma.hbm_to_vmem [thread:$0]  %s30_s22, 512, %s32_s26, [#allocation6], %s1144_s23, %s1144_s23, %s1145_s24  }
   0x9   :  { %1137 = dma.done.wait [#allocation3], 512  }
   0xa   :  { %1138 = vsyncadd [#allocation3], 4294966784 }
   0xb   :  { %1139 = dma.done.wait [#allocation6], 512  }
   0xc   :  { %1140 = vsyncadd [#allocation6], 4294966784  ;;  %v52_v0 = vlaneseq  ;;  %vm147_vm0 = vcmask 523264   ;;  %v1213_v11 = vld [vmem:[%s1999_s2] ss:$0 sm:$0xff]  ;;  %v1147_v18 = vmov 1.0  }
   0xd   :  { %v143_v12 = vld [vmem:[#allocation2] sm:$0xff]  ;;  %v1148_v19 = vmov 0.0   ;;  %v144_v53 = vld [vmem:[#allocation2 + $0x8] sm:$0xff]  ;;  %s949_s5 = sshll.u32 %s2001_s4, 4  ;;  %s950_s5 = int_to_ptr.hbm [resolvable:$true] %s949_s5 }
   0xe   :  { %v1181_v1 = vshrl.u32 %v52_v0, 7  ;;  %v149_v14 = vsel %vm147_vm0, %v143_v12, 0  ;;  %v1326_v40 = vld [vmem:[%s2000_s3] ss:$0 sm:$0xff]  ;;  %v152_v63 = vsel %vm147_vm0, %v144_v53, 0  ;;  %s1149_s3 = smov [#allocation7]  }
   0xf   :  { %v1302_v33 = vand.u32 4294901760, %v149_v14  ;;  %s947_s28 = sshll.u32 %s1149_s3, 4  ;;  %s948_s28 = int_to_ptr.vmem [resolvable:$true] %s947_s28 }
  0x10   :  { %v1184_v2 = vadd.s32 56, %v1181_v1  ;;  %v1187_v3 = vadd.s32 48, %v1181_v1  ;;  %v1190_v4 = vadd.s32 40, %v1181_v1  ;;  %v1193_v5 = vadd.s32 32, %v1181_v1 }
  0x11   :  { %v1196_v6 = vadd.s32 24, %v1181_v1  ;;  %v1199_v7 = vadd.s32 16, %v1181_v1  ;;  %v1202_v8 = vadd.s32 8, %v1181_v1  ;;  %v1205_v9 = vadd.s32 120, %v1181_v1 }
  0x12   :  { %v1208_v10 = vadd.s32 112, %v1181_v1  ;;  %v1216_v13 = vadd.s32 104, %v1181_v1  ;;  %v1220_v15 = vadd.s32 96, %v1181_v1  ;;  %v1223_v16 = vadd.s32 88, %v1181_v1 }
  0x13   :  { %v1226_v17 = vadd.s32 80, %v1181_v1  ;;  %vm69_vm1 = vcmp.eq.s32.totalorder %v1184_v2, %v1213_v11  ;;  %vm68_vm2 = vcmp.eq.s32.totalorder %v1187_v3, %v1213_v11  ;;  %vm67_vm3 = vcmp.eq.s32.totalorder %v1190_v4, %v1213_v11 }
  0x14   :  { %vm66_vm4 = vcmp.eq.s32.totalorder %v1193_v5, %v1213_v11  ;;  %984 = vmatpush.msk.msra.mxu0 %vm69_vm1, %v1147_v18  ;;  %v967_v20 = vsel %vm69_vm1, 1.0, %v1148_v19  ;;  %992 = vmatpush.msk.msra.mxu3 %vm69_vm1, %v1147_v18  ;;  %v966_v21 = vsel %vm68_vm2, 1.0, %v1148_v19  ;;  %vm65_vm5 = vcmp.eq.s32.totalorder %v1196_v6, %v1213_v11 }
  0x15   :  { %v965_v22 = vsel %vm67_vm3, 1.0, %v1148_v19  ;;  %v1258_v23 = vsub.f32 %v967_v20, %v967_v20  ;;  %v1260_v24 = vsub.f32 %v966_v21, %v966_v21  ;;  %vm64_vm6 = vcmp.eq.s32.totalorder %v1199_v7, %v1213_v11  ;;  %v145_v21 = vld [vmem:[#allocation2 + $0x10] sm:$0xff] }
  0x16   :  { %v1262_v25 = vsub.f32 %v965_v22, %v965_v22  ;;  %985 = vmatpush.msk.msra.mxu0 %vm68_vm2, %v1147_v18  ;;  %993 = vmatpush.msk.msra.mxu3 %vm68_vm2, %v1147_v18  ;;  %v964_v26 = vsel %vm66_vm4, 1.0, %v1148_v19  ;;  %vm63_vm7 = vcmp.eq.s32.totalorder %v1202_v8, %v1213_v11  ;;  %v963_v27 = vsel %vm65_vm5, 1.0, %v1148_v19 }
  0x17   :  { %vm62_vm8 = vcmp.eq.s32.totalorder %v1181_v1, %v1213_v11  ;;  %300 = vmatpush.msra.mxu2 %v1258_v23  ;;  %v227_v28 = vand.u32 4294901760, %v1258_v23  ;;  %v233_v29 = vand.u32 4294901760, %v1260_v24  ;;  %v1289_v30 = vsub.f32 %v964_v26, %v964_v26 }
  0x18   :  { %v239_v31 = vand.u32 4294901760, %v1262_v25  ;;  %986 = vmatpush.msk.msra.mxu0 %vm67_vm3, %v1147_v18  ;;  %994 = vmatpush.msk.msra.mxu3 %vm67_vm3, %v1147_v18  ;;  %v1300_v32 = vsub.f32 %v963_v27, %v963_v27  ;;  %v962_v34 = vsel %vm64_vm6, 1.0, %v1148_v19  ;;  %v961_v35 = vsel %vm63_vm7, 1.0, %v1148_v19 }
  0x19   :  { %303 = vmatpush.msra.mxu2 %v1260_v24  ;;  %v228_v36 = vsub.f32 %v1258_v23, %v227_v28  ;;  %v234_v37 = vsub.f32 %v1260_v24, %v233_v29  ;;  %v245_v39 = vand.u32 4294901760, %v1289_v30  ;;  %v1337_v41 = vsub.f32 %v149_v14, %v1302_v33 }
  0x1a   :  { %v240_v38 = vsub.f32 %v1262_v25, %v239_v31  ;;  %987 = vmatpush.msk.msra.mxu0 %vm66_vm4, %v1147_v18  ;;  %995 = vmatpush.msk.msra.mxu3 %vm66_vm4, %v1147_v18  ;;  %v1339_v42 = vsub.f32 %v962_v34, %v962_v34  ;;  %v251_v43 = vand.u32 4294901760, %v1300_v32  ;;  %v1342_v44 = vsub.f32 %v961_v35, %v961_v35 }
  0x1b   :  { %v229_v45 = vand.u32 4294901760, %v228_v36  ;;  %306 = vmatpush.msra.mxu2 %v1262_v25  ;;  %v235_v46 = vand.u32 4294901760, %v234_v37  ;;  %v246_v48 = vsub.f32 %v1289_v30, %v245_v39  ;;  %v186_v49 = vand.u32 4294901760, %v1337_v41 }
  0x1c   :  { %v241_v47 = vand.u32 4294901760, %v240_v38  ;;  %988 = vmatpush.msk.msra.mxu0 %vm65_vm5, %v1147_v18  ;;  %996 = vmatpush.msk.msra.mxu3 %vm65_vm5, %v1147_v18  ;;  %v252_v50 = vsub.f32 %v1300_v32, %v251_v43  ;;  %v257_v51 = vand.u32 4294901760, %v1339_v42  ;;  %v960_v52 = vsel %vm62_vm8, 1.0, %v1148_v19 }
  0x1d   :  { %230 = vmatpush.msra.mxu1 %v229_v45  ;;  %309 = vmatpush.msra.mxu2 %v1289_v30  ;;  %v247_v54 = vand.u32 4294901760, %v246_v48  ;;  %v1366_v55 = vsub.f32 %v960_v52, %v960_v52  ;;  %vm2002_vm9 = vcmp.eq.s32.totalorder %v1205_v9, %v1326_v40  ;;  %v263_v56 = vand.u32 4294901760, %v1342_v44 }
  0x1e   :  { %989 = vmatpush.msk.msra.mxu0 %vm64_vm6, %v1147_v18  ;;  %v187_v57 = vsub.f32 %v1337_v41, %v186_v49  ;;  %997 = vmatpush.msk.msra.mxu3 %vm64_vm6, %v1147_v18  ;;  %v253_v58 = vand.u32 4294901760, %v252_v50  ;;  %v258_v59 = vsub.f32 %v1339_v42, %v257_v51  ;;  %v983_v60 = vsel %vm2002_vm9, 1.0, %v1148_v19 }
  0x1f   :  { %236 = vmatpush.msra.mxu1 %v235_v46  ;;  %312 = vmatpush.msra.mxu2 %v1300_v32  ;;  %v264_v61 = vsub.f32 %v1342_v44, %v263_v56  ;;  %v1391_v62 = vsub.f32 %v983_v60, %v983_v60  ;;  %vm2003_vm10 = vcmp.eq.s32.totalorder %v1208_v10, %v1326_v40  ;;  %v1404_v14 = vand.u32 4294901760, %v152_v63 }
  0x20   :  { %990 = vmatpush.msk.msra.mxu0 %vm63_vm7, %v1147_v18  ;;  %v188_v0 = vand.u32 4294901760, %v187_v57  ;;  %998 = vmatpush.msk.msra.mxu3 %vm63_vm7, %v1147_v18  ;;  %v259_v12 = vand.u32 4294901760, %v258_v59  ;;  %v269_v20 = vand.u32 4294901760, %v1366_v55  ;;  %v982_v27 = vsel %vm2003_vm10, 1.0, %v1148_v19 }
  0x21   :  { %242 = vmatpush.msra.mxu1 %v241_v47  ;;  %315 = vmatpush.msra.mxu2 %v1339_v42  ;;  %v265_v22 = vand.u32 4294901760, %v264_v61  ;;  %v561_v26 = vand.u32 4294901760, %v1391_v62  ;;  %vm108_vm11 = vcmp.eq.s32.totalorder %v1216_v13, %v1326_v40  ;;  %v1424_v34 = vsub.f32 %v152_v63, %v1404_v14 }
  0x22   :  { %991 = vmatpush.msk.msra.mxu0 %vm62_vm8, %v1147_v18  ;;  %999 = vmatpush.msk.msra.mxu3 %vm62_vm8, %v1147_v18  ;;  %v270_v35 = vsub.f32 %v1366_v55, %v269_v20  ;;  %v1429_v36 = vsub.f32 %v982_v27, %v982_v27  ;;  %v981_v37 = vsel %vm108_vm11, 1.0, %v1148_v19  ;;  %vm107_vm12 = vcmp.eq.s32.totalorder %v1220_v15, %v1326_v40 }
  0x23   :  { %189 = vmatmul.f32.vlgmr.msra.gmra.mxu0 %v188_v0  ;;  %248 = vmatpush.msra.mxu1 %v247_v54  ;;  %v562_v38 = vsub.f32 %v1391_v62, %v561_v26  ;;  %v1438_v45 = vsub.f32 %v981_v37, %v981_v37  ;;  %v155_v46 = vsel %vm147_vm0, %v145_v21, 0  ;;  %v194_v47 = vand.u32 4294901760, %v1424_v34 }
  0x24   :  { %318 = vmatpush.msra.mxu2 %v1342_v44  ;;  %370 = vmatmul.f32.vlgmr.msra.gmra.mxu3 %v186_v49  ;;  %v271_v48 = vand.u32 4294901760, %v270_v35  ;;  %v567_v50 = vand.u32 4294901760, %v1429_v36  ;;  %v980_v52 = vsel %vm107_vm12, 1.0, %v1148_v19  ;;  %vm106_vm13 = vcmp.eq.s32.totalorder %v1223_v16, %v1326_v40 }
  0x25   :  { %254 = vmatpush.msra.mxu1 %v253_v58  ;;  %v563_v53 = vand.u32 4294901760, %v562_v38  ;;  %403 = vmatpush.msrb.mxu0 %v227_v28  ;;  %v2015_v54 = vand.u32 4294901760, %v1438_v45  ;;  %v1453_v57 = vsub.f32 %v980_v52, %v980_v52  ;;  %v195_v49 = vsub.f32 %v1424_v34, %v194_v47 }
  0x26   :  { %321 = vmatpush.msra.mxu2 %v1366_v55  ;;  %v568_v59 = vsub.f32 %v1429_v36, %v567_v50  ;;  %v979_v23 = vsel %vm106_vm13, 1.0, %v1148_v19  ;;  %vm105_vm14 = vcmp.eq.s32.totalorder %v1226_v17, %v1326_v40  ;;  %v1475_v61 = vand.u32 4294901760, %v155_v46  ;;  %v492_v55 = vld [vmem:[#allocation5 + $0x10] sm:$0xff] }
  0x27   :  { %260 = vmatpush.msra.mxu1 %v259_v12  ;;  %324 = vmatmul.f32.vlgmr.msra.gmra.mxu2 %v1337_v41  ;;  %v574_v28 = vsub.f32 %v1438_v45, %v2015_v54  ;;  %v2014_v58 = vand.u32 4294901760, %v1453_v57  ;;  %v1473_v60 = vsub.f32 %v979_v23, %v979_v23  ;;  %v196_v63 = vand.u32 4294901760, %v195_v49 }
  0x28   :  { %1008 = vmatpush.msk.msrb.mxu2 %vm2002_vm9, %v1147_v18  ;;  %564 = vmatpush.msrb.mxu3 %v563_v53  ;;  %v569_v0 = vand.u32 4294901760, %v568_v59  ;;  %v978_v41 = vsel %vm105_vm14, 1.0, %v1148_v19  ;;  %v1486_v12 = vadd.s32 72, %v1181_v1  ;;  %v1495_v37 = vsub.f32 %v155_v46, %v1475_v61  ;;  %v146_v59 = vld [vmem:[#allocation2 + $0x18] sm:$0xff] }
  0x29   :  { %266 = vmatpush.msra.mxu1 %v265_v22  ;;  %v575_v21 = vand.u32 4294901760, %v574_v28  ;;  %407 = vmatpush.msrb.mxu0 %v233_v29  ;;  %v580_v27 = vsub.f32 %v1453_v57, %v2014_v58  ;;  %v2010_v35 = vand.u32 4294901760, %v1473_v60  ;;  %v1501_v22 = vsub.f32 %v978_v41, %v978_v41 }
  0x2a   :  { %1009 = vmatpush.msk.msrb.mxu2 %vm2003_vm10, %v1147_v18  ;;  %570 = vmatpush.msrb.mxu3 %v569_v0  ;;  %vm2008_vm15 = vcmp.eq.s32.totalorder %v1486_v12, %v1326_v40  ;;  %v1506_v24 = vadd.s32 64, %v1181_v1  ;;  %vm102_vm9 = vcmp.eq.s32.totalorder %v1184_v2, %v1326_v40  ;;  %v202_v46 = vand.u32 4294901760, %v1495_v37 }
  0x2b   :  { %197 = vmatmul.f32.gmra.mxu0 %v196_v63  ;;  %272 = vmatpush.msra.mxu1 %v271_v48  ;;  %v581_v29 = vand.u32 4294901760, %v580_v27  ;;  %v586_v38 = vsub.f32 %v1473_v60, %v2010_v35  ;;  %v977_v52 = vsel %vm2008_vm15, 1.0, %v1148_v19  ;;  %v2004_v48 = vand.u32 4294901760, %v1501_v22 }
  0x2c   :  { %274 = vmatmul.f32.vlgmr.msra.gmra.mxu1 %v1302_v33  ;;  %1010 = vmatpush.msk.msrb.mxu2 %vm108_vm11, %v1147_v18  ;;  %v1524_v53 = vsub.f32 %v977_v52, %v977_v52  ;;  %vm2011_vm10 = vcmp.eq.s32.totalorder %v1506_v24, %v1326_v40  ;;  %v975_v49 = vsel %vm102_vm9, 1.0, %v1148_v19  ;;  %v203_v28 = vsub.f32 %v1495_v37, %v202_v46 }
  0x2d   :  { %1000 = vmatpush.msk.msrb.mxu1 %vm69_vm1, %v1147_v18  ;;  %576 = vmatpush.msrb.mxu3 %v575_v21  ;;  %v587_v23 = vand.u32 4294901760, %v586_v38  ;;  %v976_v63 = vsel %vm2011_vm10, 1.0, %v1148_v19  ;;  %v1543_v0 = vsub.f32 %v975_v49, %v975_v49  ;;  %v592_v41 = vsub.f32 %v1501_v22, %v2004_v48 }
  0x2e   :  { %1011 = vmatpush.msk.msrb.mxu2 %vm107_vm12, %v1147_v18  ;;  %376 = vmatmul.f32.gmra.mxu3 %v194_v47  ;;  %v2006_v21 = vand.u32 4294901760, %v1524_v53  ;;  %v1553_v27 = vsub.f32 %v976_v63, %v976_v63  ;;  %vm101_vm1 = vcmp.eq.s32.totalorder %v1187_v3, %v1326_v40  ;;  %v204_v38 = vand.u32 4294901760, %v203_v28 }
  0x2f   :  { %582 = vmatpush.msrb.mxu3 %v581_v29  ;;  %329 = vmatmul.f32.gmra.mxu2 %v1424_v34  ;;  %v2005_v52 = vand.u32 4294901760, %v1543_v0  ;;  %v158_v49 = vsel %vm147_vm0, %v146_v59, 0  ;;  %v974_v47 = vsel %vm101_vm1, 1.0, %v1148_v19  ;;  %v593_v34 = vand.u32 4294901760, %v592_v41 }
  0x30   :  { %1001 = vmatpush.msk.msrb.mxu1 %vm68_vm2, %v1147_v18  ;;  %1012 = vmatpush.msk.msrb.mxu2 %vm106_vm13, %v1147_v18  ;;  %v598_v29 = vsub.f32 %v1524_v53, %v2006_v21  ;;  %v2007_v59 = vand.u32 4294901760, %v1553_v27  ;;  %v1576_v28 = vand.u32 4294901760, %v158_v49  ;;  %v1583_v48 = vsub.f32 %v974_v47, %v974_v47 }
  0x31   :  { %588 = vmatpush.msrb.mxu3 %v587_v23  ;;  %411 = vmatpush.msrb.mxu0 %v239_v31  ;;  %v610_v63 = vsub.f32 %v1543_v0, %v2005_v52  ;;  %vm100_vm0 = vcmp.eq.s32.totalorder %v1190_v4, %v1326_v40  ;;  %vm99_vm2 = vcmp.eq.s32.totalorder %v1193_v5, %v1326_v40  ;;  %v2023_v13 = vand.u32 4294901760, %v1501_v22 }
  0x32   :  { %1013 = vmatpush.msk.msrb.mxu2 %vm105_vm14, %v1147_v18  ;;  %1002 = vmatpush.msk.msrb.mxu1 %vm67_vm3, %v1147_v18  ;;  %v599_v25 = vand.u32 4294901760, %v598_v29  ;;  %v604_v31 = vsub.f32 %v1553_v27, %v2007_v59  ;;  %v1599_v23 = vsub.f32 %v158_v49, %v1576_v28  ;;  %v973_v41 = vsel %vm100_vm0, 1.0, %v1148_v19  ;;  %v490_v29 = vld [vmem:[#allocation5] sm:$0xff] }
  0x33   :  { %205 = vmatmul.f32.gmra.mxu0 %v204_v38  ;;  %594 = vmatpush.msrb.mxu3 %v593_v34  ;;  %v611_v47 = vand.u32 4294901760, %v610_v63  ;;  %v2009_v52 = vand.u32 4294901760, %v1583_v48  ;;  %v1606_v21 = vsub.f32 %v973_v41, %v973_v41  ;;  %v972_v34 = vsel %vm99_vm2, 1.0, %v1148_v19 }
  0x34   :  { %278 = vmatmul.f32.gmra.mxu1 %v1404_v14  ;;  %1014 = vmatpush.msk.msrb.mxu2 %vm2008_vm15, %v1147_v18  ;;  %v605_v49 = vand.u32 4294901760, %v604_v31  ;;  %v210_v38 = vand.u32 4294901760, %v1599_v23  ;;  %vm98_vm3 = vcmp.eq.s32.totalorder %v1196_v6, %v1326_v40  ;;  %v1628_v41 = vsub.f32 %v972_v34, %v972_v34 }
  0x35   :  { %600 = vmatpush.msrb.mxu3 %v599_v25  ;;  %415 = vmatpush.msrb.mxu0 %v245_v39  ;;  %v616_v63 = vsub.f32 %v1583_v48, %v2009_v52  ;;  %v2012_v31 = vand.u32 4294901760, %v1606_v21  ;;  %v971_v59 = vsel %vm98_vm3, 1.0, %v1148_v19  ;;  %vm97_vm15 = vcmp.eq.s32.totalorder %v1199_v7, %v1326_v40 }
  0x36   :  { %1015 = vmatpush.msk.msrb.mxu2 %vm2011_vm10, %v1147_v18  ;;  %382 = vmatmul.f32.gmra.mxu3 %v202_v46  ;;  %v211_v30 = vsub.f32 %v1599_v23, %v210_v38  ;;  %v1641_v39 = vsub.f32 %v971_v59, %v971_v59  ;;  %v1645_v25 = vand.u32 4294901760, %v490_v29  ;;  %v2013_v35 = vand.u32 4294901760, %v1628_v41 }
  0x37   :  { %606 = vmatpush.msrb.mxu3 %v605_v49  ;;  %334 = vmatmul.f32.gmra.mxu2 %v1495_v37  ;;  %v617_v34 = vand.u32 4294901760, %v616_v63  ;;  %v622_v52 = vsub.f32 %v1606_v21, %v2012_v31  ;;  %v970_v46 = vsel %vm97_vm15, 1.0, %v1148_v19  ;;  %vm96_vm10 = vcmp.eq.s32.totalorder %v1202_v8, %v1326_v40 }
  0x38   :  { %1003 = vmatpush.msk.msrb.mxu1 %vm66_vm4, %v1147_v18  ;;  %1016 = vmatpush.msk.msrb.mxu2 %vm102_vm9, %v1147_v18  ;;  %v212_v37 = vand.u32 4294901760, %v211_v30  ;;  %v633_v59 = vand.u32 4294901760, %v1641_v39  ;;  %v1665_v49 = vsub.f32 %v970_v46, %v970_v46  ;;  %v628_v31 = vsub.f32 %v1628_v41, %v2013_v35  ;;  %v491_v46 = vld [vmem:[#allocation5 + $0x8] sm:$0xff] }
  0x39   :  { %612 = vmatpush.msrb.mxu3 %v611_v47  ;;  %419 = vmatpush.msrb.mxu0 %v251_v43  ;;  %v623_v63 = vand.u32 4294901760, %v622_v52  ;;  %v969_v30 = vsel %vm96_vm10, 1.0, %v1148_v19  ;;  %vm95_vm4 = vcmp.eq.s32.totalorder %v1181_v1, %v1326_v40  ;;  %v1701_v54 = vsub.f32 %v490_v29, %v1645_v25 }
  0x3a   :  { %1017 = vmatpush.msk.msrb.mxu2 %vm101_vm1, %v1147_v18  ;;  %1004 = vmatpush.msk.msrb.mxu1 %vm65_vm5, %v1147_v18  ;;  %v634_v32 = vsub.f32 %v1641_v39, %v633_v59  ;;  %v639_v43 = vand.u32 4294901760, %v1665_v49  ;;  %v1692_v52 = vsub.f32 %v969_v30, %v969_v30  ;;  %v968_v47 = vsel %vm95_vm4, 1.0, %v1148_v19 }
  0x3b   :  { %213 = vmatmul.f32.gmra.mxu0 %v212_v37  ;;  %618 = vmatpush.msrb.mxu3 %v617_v34  ;;  %v629_v35 = vand.u32 4294901760, %v628_v31  ;;  %v1698_v58 = vsub.f32 %v968_v47, %v968_v47  ;;  %v528_v34 = vand.u32 4294901760, %v1701_v54  ;;  %v1716_v30 = vand.u32 4294901760, %v491_v46 }
  0x3c   :  { %282 = vmatmul.f32.gmra.mxu1 %v1475_v61  ;;  %1018 = vmatpush.msk.msrb.mxu2 %vm100_vm0, %v1147_v18  ;;  %v640_v19 = vsub.f32 %v1665_v49, %v639_v43  ;;  %v645_v37 = vand.u32 4294901760, %v1692_v52  ;;  %v635_v31 = vand.u32 4294901760, %v634_v32  ;;  %v1772_v32 = vand.u32 4294901760, %v492_v55 }
  0x3d   :  { %624 = vmatpush.msrb.mxu3 %v623_v63  ;;  %423 = vmatpush.msrb.mxu0 %v257_v51  ;;  %v651_v29 = vand.u32 4294901760, %v1698_v58  ;;  %v1743_v44 = vsub.f32 %v491_v46, %v1716_v30  ;;  %vm2016_vm5 = vcmp.eq.s32.totalorder %v1205_v9, %v1326_v40  ;;  %v493_v9 = vld [vmem:[#allocation5 + $0x18] sm:$0xff]  ;;  %v2025_v16 = vand.u32 4294901760, %v1553_v27 }
  0x3e   :  { %1019 = vmatpush.msk.msrb.mxu2 %vm99_vm2, %v1147_v18  ;;  %388 = vmatmul.f32.gmra.mxu3 %v210_v38  ;;  %v646_v63 = vsub.f32 %v1692_v52, %v645_v37  ;;  %v641_v42 = vand.u32 4294901760, %v640_v19  ;;  %v529_v38 = vsub.f32 %v1701_v54, %v528_v34  ;;  %v1791_v47 = vsub.f32 %v492_v55, %v1772_v32 }
  0x3f   :  { %630 = vmatpush.msrb.mxu3 %v629_v35  ;;  %339 = vmatmul.f32.gmra.mxu2 %v1599_v23  ;;  %v652_v51 = vsub.f32 %v1698_v58, %v651_v29  ;;  %v2028_v17 = vand.u32 4294901760, %v1543_v0 }
  0x40   :  { %427 = vmatpush.msrb.mxu0 %v263_v56  ;;  %1005 = vmatpush.msk.msrb.mxu1 %vm64_vm6, %v1147_v18  ;;  %v647_v56 = vand.u32 4294901760, %v646_v63  ;;  %v530_v23 = vand.u32 4294901760, %v529_v38  ;;  %vm2017_vm6 = vmmov %vm2016_vm5 }
  0x41   :  { %1020 = vmatpush.msk.msrb.mxu2 %vm98_vm3, %v1147_v18  ;;  %636 = vmatpush.msrb.mxu3 %v635_v31  ;;  %v653_v35 = vand.u32 4294901760, %v652_v51 }
  0x42   :  { %431 = vmatpush.msrb.mxu0 %v269_v20  ;;  %1006 = vmatpush.msk.msrb.mxu1 %vm63_vm7, %v1147_v18  ;;  %v536_v20 = vand.u32 4294901760, %v1743_v44  ;;  %vm2019_vm7 = vcmp.eq.s32.totalorder %v1208_v10, %v1326_v40  ;;  %v2022_v10 = vand.u32 4294901760, %v1473_v60 }
  0x43   :  { %1021 = vmatpush.msk.msrb.mxu2 %vm97_vm15, %v1147_v18  ;;  %433 = vmatmul.f32.vlgmr.msrb.gmra.mxu0 %v1302_v33 }
  0x44   :  { %642 = vmatpush.msrb.mxu3 %v641_v42  ;;  %286 = vmatmul.f32.gmra.mxu1 %v1576_v28  ;;  %v537_v11 = vsub.f32 %v1743_v44, %v536_v20 }
  0x45   :  { %1022 = vmatpush.msk.msrb.mxu2 %vm96_vm10, %v1147_v18  ;;  %674 = vmatpush.msra.mxu0 %v1391_v62 }
  0x46   :  { %648 = vmatpush.msrb.mxu3 %v647_v56  ;;  %1007 = vmatpush.msk.msrb.mxu1 %vm62_vm8, %v1147_v18  ;;  %v538_v62 = vand.u32 4294901760, %v537_v11  ;;  %vm2020_vm8 = vmmov %vm2019_vm7 }
  0x47   :  { %1023 = vmatpush.msk.msrb.mxu2 %vm95_vm4, %v1147_v18  ;;  %677 = vmatpush.msra.mxu0 %v1429_v36  ;;  %v2021_v36 = vand.u32 4294901760, %v1453_v57 }
  0x48   :  { %654 = vmatpush.msrb.mxu3 %v653_v35  ;;  %531 = vmatmul.f32.vlgmr.msrb.gmra.mxu2 %v530_v23 }
  0x49   :  { %656 = vmatmul.f32.vlgmr.msrb.gmra.mxu3 %v1645_v25  ;;  %680 = vmatpush.msra.mxu0 %v1438_v45 }
  0x4a   :  { %801 = vmatpush.msra.mxu2 %v561_v26  ;;  %1040 = vmatpush.msk.msra.mxu3 %vm2016_vm5, %v1147_v18  ;;  %v2018_v26 = vand.u32 4294901760, %v1438_v45  ;;  %v1817_v45 = vand.u32 4294901760, %v493_v9 }
  0x4b   :  { %683 = vmatpush.msra.mxu0 %v1453_v57  ;;  %1024 = vmatpush.msk.msra.mxu1 %vm2017_vm6, %v1147_v18 }
  0x4c   :  { %805 = vmatpush.msra.mxu2 %v567_v50  ;;  %437 = vmatmul.f32.gmra.mxu0 %v1404_v14  ;;  %v1845_v57 = vsub.f32 %v493_v9, %v1817_v45 }
  0x4d   :  { %474 = vmatmul.f32.vlgmr.msrb.gmra.mxu1 %v1302_v33  ;;  %686 = vmatpush.msra.mxu0 %v1473_v60  ;;  %v544_v33 = vand.u32 4294901760, %v1791_v47  ;;  %v2024_v60 = vand.u32 4294901760, %v1524_v53 }
  0x4e   :  { %809 = vmatpush.msra.mxu2 %v2018_v26  ;;  %1041 = vmatpush.msk.msra.mxu3 %vm2019_vm7, %v1147_v18 }
  0x4f   :  { %689 = vmatpush.msra.mxu0 %v1501_v22  ;;  %1025 = vmatpush.msk.msra.mxu1 %vm2020_vm8, %v1147_v18  ;;  %v545_v50 = vsub.f32 %v1791_v47, %v544_v33 }
  0x50   :  { %813 = vmatpush.msra.mxu2 %v2021_v36  ;;  %1042 = vmatpush.msk.msra.mxu3 %vm108_vm11, %v1147_v18 }
  0x51   :  { %539 = vmatmul.f32.gmra.mxu2 %v538_v62  ;;  %660 = vmatmul.f32.gmra.mxu3 %v1716_v30  ;;  %v546_v15 = vand.u32 4294901760, %v545_v50 }
  0x52   :  { %692 = vmatpush.msra.mxu0 %v1524_v53  ;;  %1026 = vmatpush.msk.msra.mxu1 %vm108_vm11, %v1147_v18  ;;  %vm2026_vm11 = vcmp.eq.s32.totalorder %v1486_v12, %v1326_v40  ;;  %v2031_v12 = vand.u32 4294901760, %v1583_v48 }
  0x53   :  { %817 = vmatpush.msra.mxu2 %v2022_v10  ;;  %1043 = vmatpush.msk.msra.mxu3 %vm107_vm12, %v1147_v18 }
  0x54   :  { %695 = vmatpush.msra.mxu0 %v1553_v27  ;;  %1027 = vmatpush.msk.msra.mxu1 %vm107_vm12, %v1147_v18  ;;  %vm2027_vm12 = vmmov %vm2026_vm11 }
  0x55   :  { %821 = vmatpush.msra.mxu2 %v2023_v13  ;;  %1044 = vmatpush.msk.msra.mxu3 %vm106_vm13, %v1147_v18 }
  0x56   :  { %441 = vmatmul.f32.gmra.mxu0 %v1475_v61  ;;  %478 = vmatmul.f32.gmra.mxu1 %v1404_v14  ;;  %v552_v14 = vand.u32 4294901760, %v1845_v57 }
  0x57   :  { %698 = vmatpush.msra.mxu0 %v1543_v0  ;;  %1028 = vmatpush.msk.msra.mxu1 %vm106_vm13, %v1147_v18  ;;  %vm2029_vm13 = vcmp.eq.s32.totalorder %v1506_v24, %v1326_v40 }
  0x58   :  { %825 = vmatpush.msra.mxu2 %v2024_v60  ;;  %1045 = vmatpush.msk.msra.mxu3 %vm105_vm14, %v1147_v18  ;;  %v553_v22 = vsub.f32 %v1845_v57, %v552_v14 }
  0x59   :  { %701 = vmatpush.msra.mxu0 %v1583_v48  ;;  %1029 = vmatpush.msk.msra.mxu1 %vm105_vm14, %v1147_v18  ;;  %vm2030_vm14 = vmmov %vm2029_vm13  ;;  %v2032_v48 = vand.u32 4294901760, %v1606_v21 }
  0x5a   :  { %829 = vmatpush.msra.mxu2 %v2025_v16  ;;  %1046 = vmatpush.msk.msra.mxu3 %vm2026_vm11, %v1147_v18  ;;  %v554_v24 = vand.u32 4294901760, %v553_v22 }
  0x5b   :  { %547 = vmatmul.f32.gmra.mxu2 %v546_v15  ;;  %664 = vmatmul.f32.gmra.mxu3 %v1772_v32 }
  0x5c   :  { %704 = vmatpush.msra.mxu0 %v1606_v21  ;;  %1030 = vmatpush.msk.msra.mxu1 %vm2027_vm12, %v1147_v18 }
  0x5d   :  { %833 = vmatpush.msra.mxu2 %v2028_v17  ;;  %1047 = vmatpush.msk.msra.mxu3 %vm2029_vm13, %v1147_v18 }
  0x5e   :  { %707 = vmatpush.msra.mxu0 %v1628_v41  ;;  %1031 = vmatpush.msk.msra.mxu1 %vm2030_vm14, %v1147_v18 }
  0x5f   :  { %837 = vmatpush.msra.mxu2 %v2031_v12  ;;  %1048 = vmatpush.msk.msra.mxu3 %vm102_vm9, %v1147_v18 }
  0x60   :  { %445 = vmatmul.f32.gmra.mxu0 %v1576_v28  ;;  %482 = vmatmul.f32.gmra.mxu1 %v1475_v61  ;;  %v2033_v61 = vand.u32 4294901760, %v1628_v41 }
  0x61   :  { %710 = vmatpush.msra.mxu0 %v1641_v39  ;;  %1032 = vmatpush.msk.msra.mxu1 %vm102_vm9, %v1147_v18 }
  0x62   :  { %841 = vmatpush.msra.mxu2 %v2032_v48  ;;  %1049 = vmatpush.msk.msra.mxu3 %vm101_vm1, %v1147_v18 }
  0x63   :  { %713 = vmatpush.msra.mxu0 %v1665_v49  ;;  %1033 = vmatpush.msk.msra.mxu1 %vm101_vm1, %v1147_v18 }
  0x64   :  { %845 = vmatpush.msra.mxu2 %v2033_v61  ;;  %1050 = vmatpush.msk.msra.mxu3 %vm100_vm0, %v1147_v18 }
  0x65   :  { %555 = vmatmul.f32.gmra.mxu2 %v554_v24  ;;  %668 = vmatmul.f32.gmra.mxu3 %v1817_v45 }
  0x66   :  { %716 = vmatpush.msra.mxu0 %v1692_v52  ;;  %1034 = vmatpush.msk.msra.mxu1 %vm100_vm0, %v1147_v18 }
  0x67   :  { %849 = vmatpush.msra.mxu2 %v633_v59  ;;  %1051 = vmatpush.msk.msra.mxu3 %vm99_vm2, %v1147_v18 }
  0x68   :  { %719 = vmatpush.msra.mxu0 %v1698_v58  ;;  %1035 = vmatpush.msk.msra.mxu1 %vm99_vm2, %v1147_v18 }
  0x69   :  { %853 = vmatpush.msra.mxu2 %v639_v43  ;;  %1052 = vmatpush.msk.msra.mxu3 %vm98_vm3, %v1147_v18 }
  0x6a   :  { %722 = vmatmul.f32.vlgmr.msra.gmra.mxu0 %v1701_v54  ;;  %486 = vmatmul.f32.gmra.mxu1 %v1576_v28 }
  0x6b   :  { %1036 = vmatpush.msk.msra.mxu1 %vm98_vm3, %v1147_v18  ;;  %857 = vmatpush.msra.mxu2 %v645_v37 }
  0x6c   :  { %1053 = vmatpush.msk.msra.mxu3 %vm97_vm15, %v1147_v18 }
  0x6d   :  { %1037 = vmatpush.msk.msra.mxu1 %vm97_vm15, %v1147_v18  ;;  %861 = vmatpush.msra.mxu2 %v651_v29 }
  0x6e   :  { %1054 = vmatpush.msk.msra.mxu3 %vm96_vm10, %v1147_v18  ;;  %863 = vmatmul.f32.vlgmr.msra.gmra.mxu2 %v1645_v25 }
  0x6f   :  { %1038 = vmatpush.msk.msra.mxu1 %vm96_vm10, %v1147_v18 }
  0x70   :  { %1055 = vmatpush.msk.msra.mxu3 %vm95_vm4, %v1147_v18 }
  0x71   :  { %1039 = vmatpush.msk.msra.mxu1 %vm95_vm4, %v1147_v18  ;;  %912 = vmatmul.f32.vlgmr.msra.gmra.mxu3 %v1645_v25 }
  0x72   :  { %727 = vmatmul.f32.gmra.mxu0 %v1743_v44  ;;  %776 = vmatmul.f32.vlgmr.msra.gmra.mxu1 %v528_v34 }
  0x76   :  { %867 = vmatmul.f32.gmra.mxu2 %v1716_v30 }
  0x79   :  { %916 = vmatmul.f32.gmra.mxu3 %v1716_v30 }
  0x7a   :  { %732 = vmatmul.f32.gmra.mxu0 %v1791_v47  ;;  %782 = vmatmul.f32.gmra.mxu1 %v536_v20 }
  0x7e   :  { %871 = vmatmul.f32.gmra.mxu2 %v1772_v32 }
  0x81   :  { %920 = vmatmul.f32.gmra.mxu3 %v1772_v32 }
  0x82   :  { %737 = vmatmul.f32.gmra.mxu0 %v1845_v57  ;;  %788 = vmatmul.f32.gmra.mxu1 %v544_v33 }
  0x86   :  { %875 = vmatmul.f32.gmra.mxu2 %v1817_v45 }
  0x89   :  { %924 = vmatmul.f32.gmra.mxu3 %v1817_v45 }
  0x8a   :  { %794 = vmatmul.f32.gmra.mxu1 %v552_v14 }
  0xa0   :  { %v190_v1 = vpop.f32.mrf.mxu0 }
  0xa7   :  { %v371_v2 = vpop.f32.mrf.mxu3 }
  0xa8   :  { %v198_v3 = vpop.f32.mrf.mxu0 }
  0xa9   :  { %v275_v4 = vpop.f32.mrf.mxu1 }
  0xaa   :  { %v276_v5 = vadd.f32 %v275_v4, %v190_v1  ;;  %v325_v6 = vpop.f32.mrf.mxu2 }
  0xac   :  { %v326_v7 = vadd.f32 %v325_v6, %v276_v5 }
  0xae   :  { %v372_v8 = vadd.f32 %v371_v2, %v326_v7 }
  0xb0   :  { %v206_v18 = vpop.f32.mrf.mxu0 }
  0xb1   :  { %v279_v40 = vpop.f32.mrf.mxu1  ;;  %v377_v54 = vpop.f32.mrf.mxu3 }
  0xb2   :  { %v280_v58 = vadd.f32 %v279_v40, %v198_v3  ;;  %v330_v53 = vpop.f32.mrf.mxu2 }
  0xb4   :  { %v331_v0 = vadd.f32 %v330_v53, %v280_v58 }
  0xb6   :  { %v378_v21 = vadd.f32 %v377_v54, %v331_v0 }
  0xb8   :  { %v214_v27 = vpop.f32.mrf.mxu0 }
  0xb9   :  { %v283_v28 = vpop.f32.mrf.mxu1  ;;  %v383_v25 = vpop.f32.mrf.mxu3 }
  0xba   :  { %v284_v41 = vadd.f32 %v283_v28, %v206_v18  ;;  %v335_v39 = vpop.f32.mrf.mxu2 }
  0xbc   :  { %v336_v59 = vadd.f32 %v335_v39, %v284_v41 }
  0xbe   :  { %v384_v49 = vadd.f32 %v383_v25, %v336_v59 }
  0xc0   :  { %v434_v43 = vpop.f32.mrf.mxu0 }
  0xc1   :  { %v287_v52 = vpop.f32.mrf.mxu1  ;;  %v389_v19 = vpop.f32.mrf.mxu3  ;;  %v435_v16 = vadd.f32 %v434_v43, %v372_v8 }
  0xc2   :  { %v340_v46 = vpop.f32.mrf.mxu2  ;;  %v288_v7 = vadd.f32 %v287_v52, %v214_v27 }
  0xc9   :  { %v438_v37 = vpop.f32.mrf.mxu0 }
  0xca   :  { %v475_v31 = vpop.f32.mrf.mxu1  ;;  %v439_v17 = vadd.f32 %v438_v37, %v378_v21  ;;  %v341_v21 = vadd.f32 %v340_v46, %v288_v7 }
  0xcb   :  { %v532_v29 = vpop.f32.mrf.mxu2  ;;  %v476_v48 = vadd.f32 %v475_v31, %v435_v16 }
  0xcc   :  { %v657_v34 = vpop.f32.mrf.mxu3  ;;  %v390_v37 = vadd.f32 %v389_v19, %v341_v21 }
  0xcd   :  { %v658_v11 = vadd.f32 %v657_v34, %v532_v29 }
  0xd3   :  { %v442_v30 = vpop.f32.mrf.mxu0  ;;  %v479_v63 = vpop.f32.mrf.mxu1 }
  0xd4   :  { %v540_v42 = vpop.f32.mrf.mxu2  ;;  %v661_v51 = vpop.f32.mrf.mxu3  ;;  %v480_v61 = vadd.f32 %v479_v63, %v439_v17  ;;  %v443_v58 = vadd.f32 %v442_v30, %v384_v49 }
  0xd5   :  { %v662_v36 = vadd.f32 %v661_v51, %v540_v42 }
  0xdd   :  { %v446_v38 = vpop.f32.mrf.mxu0  ;;  %v483_v44 = vpop.f32.mrf.mxu1 }
  0xde   :  { %v548_v56 = vpop.f32.mrf.mxu2  ;;  %v665_v35 = vpop.f32.mrf.mxu3  ;;  %v484_v28 = vadd.f32 %v483_v44, %v443_v58  ;;  %v447_v63 = vadd.f32 %v446_v38, %v390_v37 }
  0xdf   :  { %v666_v12 = vadd.f32 %v665_v35, %v548_v56 }
  0xe7   :  { %v723_v23 = vpop.f32.mrf.mxu0  ;;  %v487_v55 = vpop.f32.mrf.mxu1 }
  0xe8   :  { %v556_v20 = vpop.f32.mrf.mxu2  ;;  %v669_v32 = vpop.f32.mrf.mxu3  ;;  %v724_v26 = vadd.f32 %v723_v23, %v658_v11  ;;  %v488_v52 = vadd.f32 %v487_v55, %v447_v63 }
  0xe9   :  { %v670_v0 = vadd.f32 %v669_v32, %v556_v20 }
  0xef   :  { %v728_v47 = vpop.f32.mrf.mxu0  ;;  %v777_v62 = vpop.f32.mrf.mxu1 }
  0xf0   :  { %v778_v33 = vadd.f32 %v777_v62, %v724_v26  ;;  %v729_v10 = vadd.f32 %v728_v47, %v662_v36 }
  0xf1   :  { %v864_v9 = vpop.f32.mrf.mxu2 }
  0xf2   :  { %v865_v50 = vadd.f32 %v864_v9, %v778_v33 }
  0xf4   :  { %v913_v45 = vpop.f32.mrf.mxu3 }
  0xf5   :  { %v914_v22 = vadd.f32 %v913_v45, %v865_v50 }
  0xf7   :  { %v783_v13 = vpop.f32.mrf.mxu1  ;;  %v733_v15 = vpop.f32.mrf.mxu0  ;;  %v928_v3 = vmul.f32 %v914_v22, %v476_v48 }
  0xf8   :  { %v784_v57 = vadd.f32 %v783_v13, %v729_v10  ;;  %v734_v2 = vadd.f32 %v733_v15, %v666_v12 }
  0xf9   :  { %v868_v60 = vpop.f32.mrf.mxu2 }
  0xfa   :  { %v869_v14 = vadd.f32 %v868_v60, %v784_v57 }
  0xfc   :  { %v917_v24 = vpop.f32.mrf.mxu3 }
  0xfd   :  { %v918_v1 = vadd.f32 %v917_v24, %v869_v14 }
  0xff   :  { %v929_v4 = vmul.f32 %v918_v1, %v480_v61  ;;  %v789_v5 = vpop.f32.mrf.mxu1  ;;  %v738_v53 = vpop.f32.mrf.mxu0 }
 0x100   :  { %v790_v6 = vadd.f32 %v789_v5, %v734_v2  ;;  %v739_v39 = vadd.f32 %v738_v53, %v670_v0 }
 0x101   :  { %v932_v18 = vadd.f32 %v929_v4, %v928_v3  ;;  %v872_v40 = vpop.f32.mrf.mxu2 }
 0x102   :  { %v873_v54 = vadd.f32 %v872_v40, %v790_v6 }
 0x104   :  { %v921_v8 = vpop.f32.mrf.mxu3 }
 0x105   :  { %v922_v41 = vadd.f32 %v921_v8, %v873_v54 }
 0x107   :  { %v930_v25 = vmul.f32 %v922_v41, %v484_v28  ;;  %v795_v59 = vpop.f32.mrf.mxu1 }
 0x108   :  { %v796_v43 = vadd.f32 %v795_v59, %v739_v39 }
 0x109   :  { %v933_v31 = vadd.f32 %v932_v18, %v930_v25  ;;  %v876_v29 = vpop.f32.mrf.mxu2 }
 0x10a   :  { %v877_v34 = vadd.f32 %v876_v29, %v796_v43 }
 0x10c   :  { %v925_v27 = vpop.f32.mrf.mxu3 }
 0x10d   :  { %v926_v42 = vadd.f32 %v925_v27, %v877_v34 }
 0x10f   :  { %v931_v51 = vmul.f32 %v926_v42, %v488_v52 }
 0x111   :  { %v934_v49 = vadd.f32 %v933_v31, %v931_v51 }
 0x113   :  { %v935_v30 = vrot.slane %v934_v49, 4 }
 0x115   :  { %v936_v56 = vadd.f32 %v935_v30, %v934_v49 }
 0x117   :  { %v937_v35 = vrot.slane %v936_v56, 2 }
 0x119   :  { %v938_v46 = vadd.f32 %v937_v35, %v936_v56 }
 0x11b   :  { %v939_v19 = vrot.slane %v938_v46, 1 }
 0x11d   :  { %v940_v44 = vadd.f32 %v939_v19, %v938_v46 }
 0x11f   :  { %941 = vst [vmem:[#allocation7] sm:$0x1] %v940_v44 }
 0x120   :  { %952 = dma.vmem_to_hbm [thread:$0]  %s948_s28, 16, %s950_s5, [#allocation4]  }
 0x121   :  { %1141 = dma.done.wait [#allocation4], 16  }
 0x122   :  { %1142 = vsyncadd [#allocation4], 4294967280 }
 0x123   :  { %957 = vsyncpa [#allocation3], 1 }
 0x124   :  { %958 = vsyncpa [#allocation6], 1 }
 0x125   :  { %959 = vsyncpa [#allocation4], 1 }

</bundles_post_ra>
